<compile_context>
chip_gen: v5e
topology: v5e:2x2
jax: 0.10.0
libtpu: 0.0.40
codegen_flags: <defaults>
</compile_context>

<pallas_src>
import functools

import jax
import jax.numpy as jnp
from jax import lax
from jax.experimental import pallas as pl
from jax.experimental.pallas import tpu as pltpu


LN_EPS = 1e-5  # nn.LayerNorm default


def _round_up(v, m):
    return ((v + m - 1) // m) * m


def _cdiv(a, b):
    return (a + b - 1) // b


def _ffn_kernel(x_ref, w1_ref, b1_ref, w2_ref, b2_ref, g_ref, beta_ref,
                o_ref, acc_ref):
    # x_ref: (tile, D)        w1_ref: (D, tile_h)   b1_ref: (1, tile_h) f32
    # w2_ref: (tile_h, D)     b2_ref/g_ref/beta_ref: (1, D) f32
    # acc_ref: (tile, D) f32 scratch, resident across the inner H axis.
    h_idx = pl.program_id(1)

    @pl.when(h_idx == 0)
    def _():
        acc_ref[...] = jnp.zeros_like(acc_ref)

    # fc1 chunk: cast activations to the weight dtype (bf16 weights -> 2x MXU
    # rate); accumulate in f32 via preferred_element_type.
    h = jnp.dot(x_ref[...].astype(w1_ref.dtype), w1_ref[...],
                preferred_element_type=jnp.float32)
    # Bias + ReLU in f32, then materialize directly in the fc2 weight dtype so
    # the (tile, tile_h) intermediate is as narrow as the weights.
    h = jnp.maximum(h + b1_ref[...], 0.0).astype(w2_ref.dtype)

    # fc2 chunk accumulated into the resident f32 accumulator.
    acc_ref[...] += jnp.dot(h, w2_ref[...], preferred_element_type=jnp.float32)

    @pl.when(h_idx == pl.num_programs(1) - 1)
    def _():
        # dropout(p=0.0) == identity; bias + residual + LayerNorm in f32.
        y = acc_ref[...] + b2_ref[...] + x_ref[...].astype(jnp.float32)
        mean = jnp.mean(y, axis=-1, keepdims=True)
        centered = y - mean
        var = jnp.mean(centered * centered, axis=-1, keepdims=True)
        out = centered * lax.rsqrt(var + LN_EPS)
        out = out * g_ref[...] + beta_ref[...]
        o_ref[...] = out.astype(o_ref.dtype)


def _spec(shape, index_map, *, single_buffer=False):
    """BlockSpec helper: single-buffer blocks whose contents never change."""
    if single_buffer:
        try:
            return pl.BlockSpec(shape, index_map, pipeline_mode=pl.Buffered(1))
        except (TypeError, AttributeError):
            pass  # older jax without pipeline_mode support: fall back to default
    return pl.BlockSpec(shape, index_map)


@functools.partial(jax.jit, static_argnames=("tile_m",))
def position_wise_feed_forward(x, w1, b1, w2, b2, gamma, beta, *, tile_m=512):
    """x: (batch, seq, dim_model).  Returns same shape/dtype."""
    B, S, D = x.shape
    H = w1.shape[1]
    N = B * S

    isz_x = jnp.dtype(x.dtype).itemsize
    isz_w = jnp.dtype(w1.dtype).itemsize

    # ---- Generation-aware VMEM budget --------------------------------------
    try:
        vmem_cap = int(pltpu.get_tpu_info().vmem_capacity_bytes)
    except Exception:
        vmem_cap = 64 * 1024 * 1024  # safe lower bound (v7x per-core VMEM)
    budget = int(vmem_cap * 0.85)    # ~108 MiB on v5e/v6e, ~54 MiB on v7x

    # ---- Hidden-dim tiling: shrink tile_h until the weight slabs fit inside
    # roughly half the budget (the rest goes to row tiles / intermediates). ---
    def weight_bytes(th):
        nbuf = 1 if th == H else 2          # single-buffered only when resident
        return nbuf * (2 * D * th * isz_w + th * 4)

    tile_h = H
    while (weight_bytes(tile_h) > budget // 2
           and tile_h % 2 == 0 and (tile_h // 2) % 128 == 0):
        tile_h //= 2
    n_h = H // tile_h
    # TODO(synk): if H is not 128-aligned and the weights still exceed VMEM,
    # H-padding of the weights would be required; not handled here.

    # ---- Row tile: as large as the remaining budget allows ------------------
    small = (3 * D + tile_h) * 4                        # biases + affine params
    per_row = (4 * D * isz_x                            # x + out, double-buffered
               + 4 * D                                   # f32 accumulator scratch
               + tile_h * (4 + isz_w)                    # fc1 intermediates
               + 8 * D)                                  # f32 epilogue temps
    avail = max(budget - weight_bytes(tile_h) - small, per_row * 8)
    tile_fit = max(8, (avail // per_row) // 8 * 8)

    # Keep at least two row blocks when possible so both v7x TensorCores work.
    two_block = max(8, _round_up(_cdiv(N, 2), 8))
    tile = min(tile_m, tile_fit, _round_up(N, 8), two_block)
    tile = max(8, (tile // 8) * 8)

    n_rows = _cdiv(N, tile)      # ragged last block handled by Pallas masking
    grid = (n_rows, n_h)

    x2d = x.reshape(N, D)
    b1r = b1.astype(jnp.float32).reshape(1, H)
    b2r = b2.astype(jnp.float32).reshape(1, D)
    g_r = gamma.astype(jnp.float32).reshape(1, D)
    be_r = beta.astype(jnp.float32).reshape(1, D)

    vmem_needed = weight_bytes(tile_h) + small + tile * per_row
    vmem_limit = int(min(max(2 * vmem_needed, 32 * 1024 * 1024), budget))

    cost = pl.CostEstimate(
        flops=4 * N * D * H + 12 * N * D,
        transcendentals=N,                       # one rsqrt per row
        bytes_accessed=2 * N * D * isz_x + 2 * D * H * isz_w + (H + 3 * D) * 4,
    )

    resident_w = (n_h == 1)
    out2d = pl.pallas_call(
        _ffn_kernel,
        out_shape=jax.ShapeDtypeStruct((N, D), x.dtype),
        grid_spec=pltpu.PrefetchScalarGridSpec(
            num_scalar_prefetch=0,
            grid=grid,
            in_specs=[
                pl.BlockSpec((tile, D), lambda i, h: (i, 0)),                       # x
                _spec((D, tile_h), lambda i, h: (0, h), single_buffer=resident_w),  # W1
                _spec((1, tile_h), lambda i, h: (0, h), single_buffer=resident_w),  # b1
                _spec((tile_h, D), lambda i, h: (h, 0), single_buffer=resident_w),  # W2
                _spec((1, D), lambda i, h: (0, 0), single_buffer=True),             # b2
                _spec((1, D), lambda i, h: (0, 0), single_buffer=True),             # gamma
                _spec((1, D), lambda i, h: (0, 0), single_buffer=True),             # beta
            ],
            out_specs=pl.BlockSpec((tile, D), lambda i, h: (i, 0)),
            scratch_shapes=[pltpu.VMEM((tile, D), jnp.float32)],
        ),
        compiler_params=pltpu.CompilerParams(
            dimension_semantics=("parallel", "arbitrary"),
            vmem_limit_bytes=vmem_limit,
        ),
        cost_estimate=cost,
    )(x2d, w1, b1r, w2, b2r, g_r, be_r)

    return out2d.reshape(B, S, D)


def _reference(x, w1, b1, w2, b2, gamma, beta):
    """Plain-JAX reference mirroring the PyTorch forward (dropout p=0)."""
    h = jnp.maximum(x @ w1 + b1, 0.0)
    y = h @ w2 + b2
    y = y + x
    mean = jnp.mean(y, axis=-1, keepdims=True)
    var = jnp.mean((y - mean) ** 2, axis=-1, keepdims=True)
    return (y - mean) / jnp.sqrt(var + LN_EPS) * gamma + beta


if __name__ == "__main__":
    key = jax.random.PRNGKey(0)
    k_x, k_w1, k_b1, k_w2, k_b2 = jax.random.split(key, 5)

    batch, seq, dim_model, hidden = 2, 8, 32, 64

    x = jax.random.normal(k_x, (batch, seq, dim_model), dtype=jnp.float32)

    # Deterministic parameter init (synthetic; shapes match nn.Linear / LayerNorm)
    bound1 = 1.0 / (dim_model ** 0.5)
    bound2 = 1.0 / (hidden ** 0.5)
    w1 = jax.random.uniform(k_w1, (dim_model, hidden), jnp.float32, -bound1, bound1)
    b1 = jax.random.uniform(k_b1, (hidden,), jnp.float32, -bound1, bound1)
    w2 = jax.random.uniform(k_w2, (hidden, dim_model), jnp.float32, -bound2, bound2)
    b2 = jax.random.uniform(k_b2, (dim_model,), jnp.float32, -bound2, bound2)
    gamma = jnp.ones((dim_model,), jnp.float32)
    beta = jnp.zeros((dim_model,), jnp.float32)

    out = jax.block_until_ready(
        position_wise_feed_forward(x, w1, b1, w2, b2, gamma, beta))

    ref = _reference(x, w1, b1, w2, b2, gamma, beta)
    assert out.shape == x.shape and out.dtype == x.dtype
    assert jnp.allclose(out, ref, atol=1e-5, rtol=1e-5), "mismatch vs reference"

    print("KERNEL_OK")
</pallas_src>

<mosaic_0001>
module attributes {stable_mosaic.version = 11 : i64} {
  func.func @_ffn_kernel(%arg0: i32, %arg1: i32, %arg2: memref<8x32xf32, #tpu.memory_space<vmem>>, %arg3: memref<32x64xf32, #tpu.memory_space<vmem>>, %arg4: memref<1x64xf32, #tpu.memory_space<vmem>>, %arg5: memref<64x32xf32, #tpu.memory_space<vmem>>, %arg6: memref<1x32xf32, #tpu.memory_space<vmem>>, %arg7: memref<1x32xf32, #tpu.memory_space<vmem>>, %arg8: memref<1x32xf32, #tpu.memory_space<vmem>>, %arg9: memref<8x32xf32, #tpu.memory_space<vmem>>, %arg10: memref<8x32xf32, #tpu.memory_space<vmem>>) attributes {dimension_semantics = [#tpu.dimension_semantics<parallel>, #tpu.dimension_semantics<arbitrary>], iteration_bounds = array<i64: 2, 1>, scalar_prefetch = 0 : i64, scratch_operands = 1 : i64, tpu.core_type = #tpu.core_type<tc>, window_params = [{transform_indices = @transform_0, window_bounds = array<i64: 8, 32>}, {pipeline_mode = #tpu.pipeline_mode<synchronous>, transform_indices = @transform_1, window_bounds = array<i64: 32, 64>}, {pipeline_mode = #tpu.pipeline_mode<synchronous>, transform_indices = @transform_2, window_bounds = array<i64: 1, 64>}, {pipeline_mode = #tpu.pipeline_mode<synchronous>, transform_indices = @transform_3, window_bounds = array<i64: 64, 32>}, {pipeline_mode = #tpu.pipeline_mode<synchronous>, transform_indices = @transform_4, window_bounds = array<i64: 1, 32>}, {pipeline_mode = #tpu.pipeline_mode<synchronous>, transform_indices = @transform_5, window_bounds = array<i64: 1, 32>}, {pipeline_mode = #tpu.pipeline_mode<synchronous>, transform_indices = @transform_6, window_bounds = array<i64: 1, 32>}, {transform_indices = @transform_7, window_bounds = array<i64: 8, 32>}]} {
    %c0_i32 = arith.constant 0 : i32
    %0 = arith.cmpi eq, %arg1, %c0_i32 : i32
    %1 = arith.extui %0 : i1 to i32
    %c0_i32_0 = arith.constant 0 : i32
    %2 = arith.cmpi ne, %1, %c0_i32_0 : i32
    scf.if %2 {
      %cst_16 = arith.constant 0.000000e+00 : f32
      %19 = vector.broadcast %cst_16 : f32 to vector<8x32xf32>
      %c0_17 = arith.constant 0 : index
      %c0_18 = arith.constant 0 : index
      %20 = vector.load %arg10[%c0_17, %c0_18] : memref<8x32xf32, #tpu.memory_space<vmem>>, vector<8x32xf32>
      tpu.vector_store %arg10[%c0_17, %c0_18], %19 {strides = array<i32>} : memref<8x32xf32, #tpu.memory_space<vmem>>, vector<8x32xf32>,
    } else {
    }
    %c0 = arith.constant 0 : index
    %c0_1 = arith.constant 0 : index
    %3 = vector.load %arg2[%c0, %c0_1] : memref<8x32xf32, #tpu.memory_space<vmem>>, vector<8x32xf32>
    %c0_2 = arith.constant 0 : index
    %c0_3 = arith.constant 0 : index
    %4 = vector.load %arg3[%c0_2, %c0_3] : memref<32x64xf32, #tpu.memory_space<vmem>>, vector<32x64xf32>
    %cst = arith.constant dense<0.000000e+00> : vector<8x64xf32>
    %5 = tpu.matmul %3, %4, %cst {dimension_numbers = #tpu.dot_dimension_numbers<[1], [0], [0], [1], [0, 0, 1, 1], [], []>} : vector<8x32xf32>, vector<32x64xf32>, vector<8x64xf32> -> vector<8x64xf32>
    %c0_4 = arith.constant 0 : index
    %c0_5 = arith.constant 0 : index
    %6 = vector.load %arg4[%c0_4, %c0_5] : memref<1x64xf32, #tpu.memory_space<vmem>>, vector<1x64xf32>
    %7 = vector.broadcast %6 : vector<1x64xf32> to vector<8x64xf32>
    %8 = arith.addf %5, %7 : vector<8x64xf32>
    %cst_6 = arith.constant 0.000000e+00 : f32
    %9 = vector.broadcast %cst_6 : f32 to vector<8x64xf32>
    %10 = arith.maximumf %8, %9 : vector<8x64xf32>
    %c0_7 = arith.constant 0 : index
    %c0_8 = arith.constant 0 : index
    %11 = vector.load %arg10[%c0_7, %c0_8] : memref<8x32xf32, #tpu.memory_space<vmem>>, vector<8x32xf32>
    %c0_9 = arith.constant 0 : index
    %c0_10 = arith.constant 0 : index
    %12 = vector.load %arg5[%c0_9, %c0_10] : memref<64x32xf32, #tpu.memory_space<vmem>>, vector<64x32xf32>
    %cst_11 = arith.constant dense<0.000000e+00> : vector<8x32xf32>
    %13 = tpu.matmul %10, %12, %cst_11 {dimension_numbers = #tpu.dot_dimension_numbers<[1], [0], [0], [1], [0, 0, 1, 1], [], []>} : vector<8x64xf32>, vector<64x32xf32>, vector<8x32xf32> -> vector<8x32xf32>
    %14 = arith.addf %11, %13 : vector<8x32xf32>
    %c0_12 = arith.constant 0 : index
    %c0_13 = arith.constant 0 : index
    %15 = vector.load %arg10[%c0_12, %c0_13] : memref<8x32xf32, #tpu.memory_space<vmem>>, vector<8x32xf32>
    tpu.vector_store %arg10[%c0_12, %c0_13], %14 {strides = array<i32>} : memref<8x32xf32, #tpu.memory_space<vmem>>, vector<8x32xf32>,
    %c0_i32_14 = arith.constant 0 : i32
    %16 = arith.cmpi eq, %arg1, %c0_i32_14 : i32
    %17 = arith.extui %16 : i1 to i32
    %c0_i32_15 = arith.constant 0 : i32
    %18 = arith.cmpi ne, %17, %c0_i32_15 : i32
    scf.if %18 {
      %c0_16 = arith.constant 0 : index
      %c0_17 = arith.constant 0 : index
      %19 = vector.load %arg10[%c0_16, %c0_17] : memref<8x32xf32, #tpu.memory_space<vmem>>, vector<8x32xf32>
      %c0_18 = arith.constant 0 : index
      %c0_19 = arith.constant 0 : index
      %20 = vector.load %arg6[%c0_18, %c0_19] : memref<1x32xf32, #tpu.memory_space<vmem>>, vector<1x32xf32>
      %21 = vector.broadcast %20 : vector<1x32xf32> to vector<8x32xf32>
      %22 = arith.addf %19, %21 : vector<8x32xf32>
      %c0_20 = arith.constant 0 : index
      %c0_21 = arith.constant 0 : index
      %23 = vector.load %arg2[%c0_20, %c0_21] : memref<8x32xf32, #tpu.memory_space<vmem>>, vector<8x32xf32>
      %24 = arith.addf %22, %23 : vector<8x32xf32>
      %cst_22 = arith.constant dense<0.000000e+00> : vector<8xf32>
      %25 = vector.multi_reduction <add>, %24, %cst_22 [1] : vector<8x32xf32> to vector<8xf32>
      %26 = vector.shape_cast %25 : vector<8xf32> to vector<8x1xf32>
      %cst_23 = arith.constant 3.200000e+01 : f32
      %27 = vector.broadcast %cst_23 : f32 to vector<8x1xf32>
      %28 = arith.divf %26, %27 : vector<8x1xf32>
      %29 = vector.broadcast %28 : vector<8x1xf32> to vector<8x32xf32>
      %30 = arith.subf %24, %29 : vector<8x32xf32>
      %31 = arith.mulf %30, %30 : vector<8x32xf32>
      %cst_24 = arith.constant dense<0.000000e+00> : vector<8xf32>
      %32 = vector.multi_reduction <add>, %31, %cst_24 [1] : vector<8x32xf32> to vector<8xf32>
      %33 = vector.shape_cast %32 : vector<8xf32> to vector<8x1xf32>
      %cst_25 = arith.constant 3.200000e+01 : f32
      %34 = vector.broadcast %cst_25 : f32 to vector<8x1xf32>
      %35 = arith.divf %33, %34 : vector<8x1xf32>
      %cst_26 = arith.constant 9.99999974E-6 : f32
      %36 = vector.broadcast %cst_26 : f32 to vector<8x1xf32>
      %37 = arith.addf %35, %36 : vector<8x1xf32>
      %38 = math.rsqrt %37 : vector<8x1xf32>
      %39 = vector.broadcast %38 : vector<8x1xf32> to vector<8x32xf32>
      %40 = arith.mulf %30, %39 : vector<8x32xf32>
      %c0_27 = arith.constant 0 : index
      %c0_28 = arith.constant 0 : index
      %41 = vector.load %arg7[%c0_27, %c0_28] : memref<1x32xf32, #tpu.memory_space<vmem>>, vector<1x32xf32>
      %42 = vector.broadcast %41 : vector<1x32xf32> to vector<8x32xf32>
      %43 = arith.mulf %40, %42 : vector<8x32xf32>
      %c0_29 = arith.constant 0 : index
      %c0_30 = arith.constant 0 : index
      %44 = vector.load %arg8[%c0_29, %c0_30] : memref<1x32xf32, #tpu.memory_space<vmem>>, vector<1x32xf32>
      %45 = vector.broadcast %44 : vector<1x32xf32> to vector<8x32xf32>
      %46 = arith.addf %43, %45 : vector<8x32xf32>
      %c0_31 = arith.constant 0 : index
      %c0_32 = arith.constant 0 : index
      %47 = vector.load %arg9[%c0_31, %c0_32] : memref<8x32xf32, #tpu.memory_space<vmem>>, vector<8x32xf32>
      tpu.vector_store %arg9[%c0_31, %c0_32], %46 {strides = array<i32>} : memref<8x32xf32, #tpu.memory_space<vmem>>, vector<8x32xf32>,
    } else {
    }
    return
  }
  func.func @transform_0(%arg0: i32, %arg1: i32) -> (i32, i32) {
    %c0_i32 = arith.constant 0 : i32
    %c0_i32_0 = arith.constant 0 : i32
    return %arg0, %c0_i32 : i32, i32
  }
  func.func @transform_1(%arg0: i32, %arg1: i32) -> (i32, i32) {
    %c0_i32 = arith.constant 0 : i32
    %c0_i32_0 = arith.constant 0 : i32
    return %c0_i32, %arg1 : i32, i32
  }
  func.func @transform_2(%arg0: i32, %arg1: i32) -> (i32, i32) {
    %c0_i32 = arith.constant 0 : i32
    %c0_i32_0 = arith.constant 0 : i32
    return %c0_i32, %arg1 : i32, i32
  }
  func.func @transform_3(%arg0: i32, %arg1: i32) -> (i32, i32) {
    %c0_i32 = arith.constant 0 : i32
    %c0_i32_0 = arith.constant 0 : i32
    return %arg1, %c0_i32 : i32, i32
  }
  func.func @transform_4(%arg0: i32, %arg1: i32) -> (i32, i32) {
    %c0_i32 = arith.constant 0 : i32
    %c0_i32_0 = arith.constant 0 : i32
    %c0_i32_1 = arith.constant 0 : i32
    return %c0_i32, %c0_i32_0 : i32, i32
  }
  func.func @transform_5(%arg0: i32, %arg1: i32) -> (i32, i32) {
    %c0_i32 = arith.constant 0 : i32
    %c0_i32_0 = arith.constant 0 : i32
    %c0_i32_1 = arith.constant 0 : i32
    return %c0_i32, %c0_i32_0 : i32, i32
  }
  func.func @transform_6(%arg0: i32, %arg1: i32) -> (i32, i32) {
    %c0_i32 = arith.constant 0 : i32
    %c0_i32_0 = arith.constant 0 : i32
    %c0_i32_1 = arith.constant 0 : i32
    return %c0_i32, %c0_i32_0 : i32, i32
  }
  func.func @transform_7(%arg0: i32, %arg1: i32) -> (i32, i32) {
    %c0_i32 = arith.constant 0 : i32
    %c0_i32_0 = arith.constant 0 : i32
    return %arg0, %c0_i32 : i32, i32
  }
}

</mosaic_0001>

<bundles_post_ra>
// kernel: position_wise_feed_forward.1
= control target key start
LH: loop header
LB: loop body
LE: loop exit
PB: predicated region body
PF: predicated region fallthrough
CT: control target
= control target key end

     0   :  { %12 = vsyncpa [#allocation4], 0  ;;  %s944_s0 = inlined_call_operand.vmem [shape: f32[16,32], index: 0, kind: input, shape index: {}]   ;;  %s945_s1 = inlined_call_operand.vmem [shape: f32[32,64], index: 1, kind: input, shape index: {}]   ;;  %s946_s2 = inlined_call_operand.vmem [shape: f32[1,64], index: 2, kind: input, shape index: {}]   ;;  %s947_s3 = inlined_call_operand.vmem [shape: f32[64,32], index: 3, kind: input, shape index: {}]   ;;  %s948_s4 = inlined_call_operand.vmem [shape: f32[1,32], index: 4, kind: input, shape index: {}]   ;;  %s949_s5 = inlined_call_operand.vmem [shape: f32[1,32], index: 5, kind: input, shape index: {}]   ;;  %s950_s6 = inlined_call_operand.vmem [shape: f32[1,32], index: 6, kind: input, shape index: {}]   ;;  %s951_s7 = inlined_call_operand.hbm [shape: f32[16,32], index: 7, kind: output, shape index: {}]  }
   0x1   :  { %14 = vsyncpa [#allocation4 + $0x1], 0  ;;  %s793_s24 = smov 0   ;;  %s795_s25 = smov 0  }
   0x2   :  { %s797_s26 = smov 0   ;;  %s799_s27 = smov 0  }
   0x3   :  { %s801_s28 = smov 0   ;;  %s803_s29 = smov 0  }
   0x4 LB: > { %s590_s30 = sadd.s32 4294967295, %s749_s29   ;;  %s591_s8 = sadd.s32 4294967294, %s749_s29   ;;  %s749_s29 = sphi %s803_s29, %s20_s29   ;;  %s745_s28 = sphi %s801_s28, %s958_s28   ;;  %s741_s27 = sphi %s799_s27, %s957_s27   ;;  %s737_s26 = sphi %s797_s26, %s956_s26   ;;  %s733_s25 = sphi %s795_s25, %s955_s25   ;;  %s729_s24 = sphi %s793_s24, %s954_s24  }
   0x5   : > { %s32_s9 = sadd.s32 1, %s745_s28  ;;  %s206_s10 = sadd.s32 1, %s737_s26 }
   0x6   : > { %p34_p0 = scmp.ge.s32.totalorder %s32_s9, 2  ;;  %p216_p1 = scmp.ne.s32.totalorder %s737_s26, %s733_s25 }
   0x7   : > { %p217_p2 = scmp.eq.s32.totalorder %s590_s30, 1  ;;  %p222_p3 = scmp.ne.s32.totalorder %s733_s25, %s729_s24 }
   0x8   : > { %s960_s9 = smov (%p34_p0, %s32_s9), 0  ;;  %p223_p5 = scmp.eq.s32.totalorder %s591_s8, 1 }
   0x9   : > { %p833_p4 = por %p217_p2, %p216_p1  ;;  %s203_s12 = ssub.s32 %s745_s28, %s960_s9 }
   0xa   : > { %p597_p6 = scmp.ge.s32.totalorder %s749_s29, 1  ;;  %p204_p7 = scmp.eq.s32.totalorder %s203_s12, 0 }
   0xb   : > { %p840_p8 = por %p223_p5, %p222_p3  ;;  %p279_p9 = scmp.lt.s32.totalorder %s749_s29, 3 }
   0xc   : > { %s846_s14 = scalar_select %p204_p7, %s737_s26, %s206_s10  }
   0xd   : > { %p280_p10 = pnand %p597_p6, %p279_p9 }
   0xe   : > { %p322_p11 = scmp.lt.s32.totalorder (!%p280_p10), %s741_s27, 1  ;;  %s319_s22 = sand.u32 (!%p280_p10), 1, %s733_s25  }
   0xf   : > { %283 = sbr.rel (%p280_p10) target bundleno = 569 (0x239), region = 48  ;;  %s598_s23 = sshll.u32 (!%p280_p10), %s319_s22, 3 }
  0x10   : > { %s603_s30 = sshll.u32 (!%p280_p10), %s741_s27, 3  ;;  %s321_s19 = scalar_lea.vmem (!%p280_p10), [#allocation3], %s598_s23 }
  0x11   : > { %s476_s16 = scalar_lea.hbm (!%p280_p10), %s951_s7, %s603_s30  ;;  %s466_s21 = scalar_lea.sflag (!%p280_p10), [#allocation4], %s319_s22 }
  0x12   : > { %s691_s23 = scalar_lea.hbm (!%p280_p10), %s951_s7, 16 }
  0x14   : > { %v349_v0 = vld [vmem:[%s945_s1 + $0x18] sm:$0xff]  ;;  %v348_v1 = vld [vmem:[%s945_s1 + $0x10] sm:$0xff]  ;;  %v347_v4 = vld [vmem:[%s945_s1 + $0x8] sm:$0xff]  ;;  %s323_s8 = scalar_select %p322_p11, %s741_s27, 1  ;;  %vm343_vm0 = vcmask 261120   ;;  %v751_v13 = vmov 0.0  }
  0x15   : > { %370 = vmatpush.msra.mxu0 %v349_v0  ;;  %v387_v2 = vld [vmem:[%s947_s3 + $0x38] sm:$0xff]  ;;  %v386_v3 = vld [vmem:[%s947_s3 + $0x30] sm:$0xff]  ;;  %v385_v5 = vld [vmem:[%s947_s3 + $0x28] sm:$0xff]  ;;  %344 = vst.msk [vmem:[#allocation2] sm:$0xff] %vm343_vm0, %v751_v13  ;;  %vm388_vm1 = vcmask 523264   ;;  %v752_v26 = vmov 32.0  }
  0x16   : > { %400 = vmatpush.msra.mxu1 %v387_v2  ;;  %v346_v6 = vld [vmem:[%s945_s1] sm:$0xff]  ;;  %s599_s17 = sshll.u32 %s323_s8, 3  ;;  %v383_v9 = vld [vmem:[%s947_s3 + $0x18] sm:$0xff]  ;;  %v382_v10 = vld [vmem:[%s947_s3 + $0x10] sm:$0xff]  ;;  %667 = vrcp.f32 %v752_v26  ;;  %s478_s27 = sshll.u32 %s321_s19, 4  ;;  %s479_s27 = int_to_ptr.vmem [resolvable:$true] %s478_s27 }
  0x17   : > { %371 = vmatpush.msra.mxu0 %v348_v1  ;;  %s325_s20 = scalar_lea.vmem %s944_s0, %s599_s17  ;;  %v384_v7 = vld [vmem:[%s947_s3 + $0x20] sm:$0xff]  ;;  %v381_v11 = vld [vmem:[%s947_s3 + $0x8] sm:$0xff] }
  0x18   : > { %401 = vmatpush.msra.mxu1 %v386_v3  ;;  %v345_v8 = vld [vmem:[%s325_s20] sm:$0xff]  ;;  %s480_s20 = sshll.u32 %s476_s16, 4  ;;  %s481_s20 = int_to_ptr.hbm [resolvable:$true] %s480_s20 }
  0x19   : > { %372 = vmatpush.msra.mxu0 %v347_v4  ;;  %v380_v12 = vld [vmem:[%s947_s3] sm:$0xff]  ;;  %s685_s8 = sshra.s32 %s481_s20, 4  ;;  %s686_s8 = int_to_ptr.hbm [resolvable:$true] %s685_s8 }
  0x1a   : > { %402 = vmatpush.msra.mxu1 %v385_v5  ;;  %v663_v14 = vld [vmem:[%s946_s2] ss:$0 sm:$0xff]  ;;  %s687_s30 = scalar_lea.hbm %s686_s8, 8  ;;  %p692_p1 = scmp.lt.s32.totalorder %s686_s8, %s951_s7 }
  0x1b   : > { %373 = vmatpush.msra.mxu0 %v346_v6  ;;  %v664_v21 = vld [vmem:[%s948_s4] ss:$0 sm:$0xff]  ;;  %p688_p12 = scmp.ne.s32.totalorder %s686_s8, %s687_s30  ;;  %p693_p2 = scmp.lt.s32.totalorder %s691_s23, %s687_s30 }
  0x1c   : > { %600 = vmatmul.msk.f32.vlgmr.msra.gmra.mxu0 %vm343_vm0, %v345_v8  ;;  %403 = vmatpush.msra.mxu1 %v384_v7  ;;  %v379_v18 = vld [vmem:[#allocation2] sm:$0xff]  ;;  %v668_v27 = vpop.eup %667 }
  0x1d   : > { %v429_v28 = vmul.f32 32.0, %v668_v27  ;;  %vm433_vm2 = vweird.f32 %v668_v27  ;;  %v665_v47 = vld [vmem:[%s949_s5] ss:$0 sm:$0xff]  ;;  %p689_p13 = pnand %p688_p12, %p833_p4  ;;  %p694_p3 = por %p693_p2, %p692_p1 }
  0x1e   : > { %404 = vmatpush.msra.mxu1 %v383_v9  ;;  %v666_v50 = vld [vmem:[%s950_s6] ss:$0 sm:$0xff] }
  0x1f   : > { %v430_v29 = vsub.f32 1.0, %v429_v28  ;;  %p690_p0 = pneg %p689_p13 }
  0x20   : > { %405 = vmatpush.msra.mxu1 %v382_v10 }
  0x21   : > { %v431_v30 = vmul.f32 %v668_v27, %v430_v29  ;;  %p695_p5 = pnand %p694_p3, %p690_p0 }
  0x22   : > { %406 = vmatpush.msra.mxu1 %v381_v11 }
  0x23   : > { %v432_v31 = vadd.f32 %v668_v27, %v431_v30 }
  0x24   : > { %407 = vmatpush.msra.mxu1 %v380_v12 }
  0x25   : > { %v434_v32 = vsel %vm433_vm2, %v668_v27, %v432_v31 }
  0x99   : > { %v375_v15 = vpop.f32.mrf.mxu0 }
  0x9a   : > { %v376_v16 = vadd.f32 %v663_v14, %v375_v15 }
  0x9c   : > { %v378_v17 = vmax.f32 %v376_v16, 0.0 }
  0x9e   : > { %601 = vmatmul.msk.f32.vlgmr.msra.gmra.mxu1 %vm388_vm1, %v378_v17 }
 0x11b   : > { %v409_v19 = vpop.f32.mrf.mxu1 }
 0x11c   : > { %v412_v20 = vadd.f32 %v409_v19, %v379_v18 }
 0x11e   : > { %413 = vst.msk [vmem:[#allocation2] sm:$0xff] %vm343_vm0, %v412_v20 }
 0x125   : > { %v417_v22 = vld [vmem:[#allocation2] sm:$0xff] }
 0x126   : > { %v422_v23 = vadd.f32 %v664_v21, %v417_v22 }
 0x128   : > { %v424_v24 = vadd.f32 %v422_v23, %v345_v8 }
 0x12a   : > { %v425_v25 = vsel %vm343_vm0, %v424_v24, 0.0 }
 0x12b   : > { %426 = vadd.xlane.f32.xlu0 %v425_v25 }
 0x19e   : > { %v427_v33 = vpop.xlane.xlu0 %426 }
 0x19f   : > { %v435_v34 = vmul.f32 %v434_v32, %v427_v33 }
 0x1a1   : > { %v436_v35 = vsub.f32 %v424_v24, %v435_v34 }
 0x1a3   : > { %v437_v36 = vmul.f32 %v436_v35, %v436_v35 }
 0x1a5   : > { %v438_v37 = vsel %vm343_vm0, %v437_v36, 0.0 }
 0x1a6   : > { %439 = vadd.xlane.f32.xlu0 %v438_v37 }
 0x219   : > { %v440_v38 = vpop.xlane.xlu0 %439 }
 0x21a   : > { %v441_v39 = vmul.f32 %v440_v38, %v434_v32 }
 0x21c   : > { %v442_v40 = vadd.f32 1e-05, %v441_v39 }
 0x21e   : > { %669 = vrsqrt.f32 %v442_v40  ;;  %vm449_vm4 = vweird.f32 %v442_v40 }
 0x224   : > { %v670_v41 = vpop.eup %669 }
 0x225   : > { %v444_v42 = vmul.f32 %v670_v41, %v442_v40  ;;  %vm450_vm3 = vweird.f32 %v670_v41 }
 0x226   : > { %vm451_vm5 = vmor %vm449_vm4, %vm450_vm3 }
 0x227   : > { %v445_v43 = vmul.f32 %v670_v41, %v444_v42 }
 0x229   : > { %v446_v44 = vmul.f32 0.5, %v445_v43 }
 0x22b   : > { %v447_v45 = vsub.f32 1.5, %v446_v44 }
 0x22d   : > { %v448_v46 = vmul.f32 %v670_v41, %v447_v45 }
 0x22f   : > { %v452_v48 = vsel %vm451_vm5, %v670_v41, %v448_v46 }
 0x230   : > { %v453_v49 = vmul.f32 %v452_v48, %v436_v35 }
 0x232   : > { %v458_v51 = vmul.f32 %v665_v47, %v453_v49 }
 0x234   : > { %v463_v52 = vadd.f32 %v666_v50, %v458_v51 }
 0x236   : > { %464 = vst.msk [vmem:[%s321_s19] sm:$0xff] %vm343_vm0, %v463_v52 }
 0x237   : > { %698 = shalt.err (!%p695_p5)
}
 0x238   : > { %606 = dma.vmem_to_hbm [thread:$0]  (%p833_p4), %s479_s27, 128, %s481_s20, %s466_s21  }
 0x239 PF: > { %p612_p6 = scmp.ge.s32.totalorder %s749_s29, 2  ;;  %s492_s22 = sand.u32 1, %s729_s24  }
 0x23a   : > { %s493_s17 = scalar_lea.sflag [#allocation4], %s492_s22 }
 0x23b   : > { %p609_p7 = pnand %p612_p6, %p840_p8 }
 0x23d   : > { %p610_p9 = pneg %p609_p7 }
 0x23f   : > { %724 = dma.done.wait (%p610_p9), %s493_s17, 128  }
 0x240   : > { %726 = vsyncadd (%p610_p9), %s493_s17, 4294967168  ;;  %s20_s29 = sadd.s32 1, %s749_s29   ;;  %s954_s24 = smov %s733_s25 }
 0x241   : > { %p17_p10 = scmp.ge.s32.totalorder %s20_s29, 4   ;;  %s955_s25 = smov %s737_s26 }
 0x242   : > { %s956_s26 = smov %s846_s14  ;;  %s957_s27 = smov %s745_s28 }
 0x243   : > { %s958_s28 = smov %s960_s9  ;;  %19 = sbr.rel (!%p17_p10) target bundleno = 4 (0x4), region = 100 }
 0x248   :  { %499 = vsyncpa [#allocation4], 1 }
 0x249   :  { %501 = vsyncpa [#allocation4 + $0x1], 1 }

</bundles_post_ra>
